<compile_context>
chip_gen: v5e
topology: v5e:2x2
jax: 0.10.0
libtpu: 0.0.40
codegen_flags: <defaults>
</compile_context>

<pallas_src>
import functools

import jax
import jax.numpy as jnp
from jax.experimental import pallas as pl
from jax.experimental.pallas import tpu as pltpu

_BIAS_LANES = 128  # lane-padded width of each packed bias row


def mlp_kernel(x_ref, w1_ref, wmid_ref, w5_ref, b_ref, o_ref,
               *, H, H2, D_out, compute_dtype):
    """o = relu(relu(relu(relu(x@W1+b1)@W2+b2)@W3+b3)@W4+b4)@W5+b5 (fused)."""

    def layer(h, w, b_row, width, relu):
        # MXU matmul with f32 accumulation; bias added in f32.
        acc = jnp.dot(h, w, preferred_element_type=jnp.float32) + b_row[:, :width]
        if relu:
            # Fuse the bf16 cast into the ReLU: the next layer consumes bf16
            # anyway, and this halves activation bytes / vreg pressure.
            return jnp.maximum(acc, 0.0).astype(compute_dtype)
        return acc

    h = x_ref[...].astype(compute_dtype)
    h = layer(h, w1_ref[...], b_ref[0], H,     True)   # l1    + relu
    h = layer(h, wmid_ref[0], b_ref[1], H2,    True)   # relu1 + relu
    h = layer(h, wmid_ref[1], b_ref[2], H2,    True)   # relu2 + relu
    h = layer(h, wmid_ref[2], b_ref[3], H,     True)   # relu3 + relu
    h = layer(h, w5_ref[...], b_ref[4], D_out, False)  # l2    (no relu)
    o_ref[...] = h.astype(o_ref.dtype)


def pack_params(params, compute_dtype=jnp.bfloat16):
    """One-time packing (hoisted out of the per-call path).

    params: [(W1,b1),...,(W5,b5)] with W shape (in, out), b shape (1, out), f32.
    """
    (w1, b1), (w2, b2), (w3, b3), (w4, b4), (w5, b5) = params
    D_in, H = w1.shape
    H2 = w2.shape[1]
    D_out = w5.shape[1]
    # Stacking W2..W4 requires H2 == H (true for Model1's default H2=None).
    assert w2.shape == w3.shape == w4.shape == (H, H), (
        "pack_params requires H2 == H to stack the middle weights")
    assert max(H, H2, D_out) <= _BIAS_LANES, "bias wider than one packed row"

    def pad_bias(b):
        b = jnp.asarray(b, jnp.float32).reshape(1, -1)
        return jnp.pad(b, ((0, 0), (0, _BIAS_LANES - b.shape[1])))

    packed = {
        "w1": jnp.asarray(w1, compute_dtype),                       # (D_in, H)
        "w_mid": jnp.stack([w2, w3, w4]).astype(compute_dtype),     # (3, H, H)
        "w5": jnp.asarray(w5, compute_dtype),                       # (H, D_out)
        "b": jnp.stack([pad_bias(b1), pad_bias(b2), pad_bias(b3),
                        pad_bias(b4), pad_bias(b5)]),               # (5,1,128) f32
        "D_in": D_in, "H": H, "H2": H2, "D_out": D_out,
        "compute_dtype": compute_dtype,
    }
    return packed


def _round_up(v, m):
    return ((v + m - 1) // m) * m


def mlp_pallas(x, packed, *, block_b=None):
    B, D_in = x.shape
    H, H2, D_out = packed["H"], packed["H2"], packed["D_out"]
    assert D_in == packed["D_in"]

    # --- Batch tile: single step for small/medium B; for large B use up to
    #     2048 rows/step and keep the grid length even (2 TCs on v7x). ---
    if block_b is None:
        if B <= 2048:
            block_b = B
        else:
            n_steps = -(-B // 2048)
            if n_steps % 2:
                n_steps += 1
            block_b = -(-B // n_steps)
    block_b = max(8, _round_up(block_b, 8))
    grid_len = -(-B // block_b)
    B_pad = grid_len * block_b
    x_p = jnp.pad(x, ((0, B_pad - B), (0, 0))) if B_pad != B else x

    kernel = functools.partial(
        mlp_kernel, H=H, H2=H2, D_out=D_out,
        compute_dtype=packed["compute_dtype"])

    out = pl.pallas_call(
        kernel,
        out_shape=jax.ShapeDtypeStruct((B_pad, D_out), x.dtype),
        grid=(grid_len,),
        in_specs=[
            pl.BlockSpec((block_b, D_in), lambda i: (i, 0)),
            # Constant-index specs keep the tiny (~70 KiB) weights VMEM-resident.
            pl.BlockSpec(packed["w1"].shape, lambda i: (0, 0)),
            pl.BlockSpec(packed["w_mid"].shape, lambda i: (0, 0, 0)),
            pl.BlockSpec(packed["w5"].shape, lambda i: (0, 0)),
            pl.BlockSpec(packed["b"].shape, lambda i: (0, 0, 0)),
        ],
        # Unpadded output tile (D_out == full array dim): 8x less HBM writeback
        # than a 128-lane-padded f32 output.
        out_specs=pl.BlockSpec((block_b, D_out), lambda i: (i, 0)),
        compiler_params=pltpu.CompilerParams(
            dimension_semantics=("parallel",)),
    )(x_p, packed["w1"], packed["w_mid"], packed["w5"], packed["b"])

    return out[:B] if B_pad != B else out


def init_linear_params(key, d_in, d_out):
    """Deterministic init mimicking nn.Linear (uniform(-1/sqrt(fan_in), +))."""
    kw, kb = jax.random.split(key)
    bound = 1.0 / jnp.sqrt(jnp.asarray(d_in, jnp.float32))
    w = jax.random.uniform(kw, (d_in, d_out), jnp.float32, -bound, bound)  # (in,out)
    b = jax.random.uniform(kb, (1, d_out), jnp.float32, -bound, bound)
    return w, b


def reference_mlp(x, params, compute_dtype=jnp.float32):
    """Reference matching the kernel's numerics (cast dot operands, f32 acc)."""
    h = x
    for i, (w, b) in enumerate(params):
        h = jnp.dot(h.astype(compute_dtype), w.astype(compute_dtype),
                    preferred_element_type=jnp.float32) + b
        if i < len(params) - 1:
            h = jnp.maximum(h, 0.0).astype(compute_dtype).astype(jnp.float32)
    return h


if __name__ == "__main__":
    # Model1(D_in=32, H=64, D_out=16) with H2 defaulting to H.
    D_in, H, D_out = 32, 64, 16
    B = 16

    root = jax.random.PRNGKey(0)
    kx, k1, k2, k3, k4, k5 = jax.random.split(root, 6)

    x = jax.random.normal(kx, (B, D_in), jnp.float32)

    params = [
        init_linear_params(k1, D_in, H),   # l1
        init_linear_params(k2, H, H),      # relu1
        init_linear_params(k3, H, H),      # relu2
        init_linear_params(k4, H, H),      # relu3
        init_linear_params(k5, H, D_out),  # l2
    ]

    packed = pack_params(params)           # one-time pack / cast / pad
    out = mlp_pallas(x, packed)            # single grid step for B=16
    out = jax.block_until_ready(out)
    assert out.shape == (B, D_out)

    # Tight check against a reference with the same bf16-operand / f32-accumulate
    # numerics as the kernel ...
    ref_bf16 = reference_mlp(x, params, compute_dtype=jnp.bfloat16)
    assert jnp.allclose(out, ref_bf16, atol=2e-3, rtol=2e-3)
    # ... and a loose sanity check against the full-f32 reference.
    ref_f32 = reference_mlp(x, params, compute_dtype=jnp.float32)
    assert jnp.allclose(out, ref_f32, atol=5e-2, rtol=5e-2)

    print("KERNEL_OK")
</pallas_src>

<mosaic_0001>
module attributes {stable_mosaic.version = 11 : i64} {
  func.func @mlp_kernel(%arg0: i32, %arg1: memref<16x32xf32, #tpu.memory_space<vmem>>, %arg2: memref<32x64xbf16, #tpu.memory_space<vmem>>, %arg3: memref<3x64x64xbf16, #tpu.memory_space<vmem>>, %arg4: memref<64x16xbf16, #tpu.memory_space<vmem>>, %arg5: memref<5x1x128xf32, #tpu.memory_space<vmem>>, %arg6: memref<16x16xf32, #tpu.memory_space<vmem>>) attributes {dimension_semantics = [#tpu.dimension_semantics<parallel>], iteration_bounds = array<i64: 1>, scalar_prefetch = 0 : i64, scratch_operands = 0 : i64, tpu.core_type = #tpu.core_type<tc>, window_params = [{transform_indices = @transform_0, window_bounds = array<i64: 16, 32>}, {pipeline_mode = #tpu.pipeline_mode<synchronous>, transform_indices = @transform_1, window_bounds = array<i64: 32, 64>}, {pipeline_mode = #tpu.pipeline_mode<synchronous>, transform_indices = @transform_2, window_bounds = array<i64: 3, 64, 64>}, {pipeline_mode = #tpu.pipeline_mode<synchronous>, transform_indices = @transform_3, window_bounds = array<i64: 64, 16>}, {pipeline_mode = #tpu.pipeline_mode<synchronous>, transform_indices = @transform_4, window_bounds = array<i64: 5, 1, 128>}, {transform_indices = @transform_5, window_bounds = array<i64: 16, 16>}]} {
    %c0 = arith.constant 0 : index
    %c0_0 = arith.constant 0 : index
    %0 = vector.load %arg1[%c0, %c0_0] : memref<16x32xf32, #tpu.memory_space<vmem>>, vector<16x32xf32>
    %1 = arith.truncf %0 : vector<16x32xf32> to vector<16x32xbf16>
    %c0_1 = arith.constant 0 : index
    %c0_2 = arith.constant 0 : index
    %2 = vector.load %arg2[%c0_1, %c0_2] : memref<32x64xbf16, #tpu.memory_space<vmem>>, vector<32x64xbf16>
    %c0_3 = arith.constant 0 : index
    %c0_4 = arith.constant 0 : index
    %c0_5 = arith.constant 0 : index
    %3 = vector.load %arg5[%c0_3, %c0_4, %c0_5] : memref<5x1x128xf32, #tpu.memory_space<vmem>>, vector<1x1x128xf32>
    %4 = vector.shape_cast %3 : vector<1x1x128xf32> to vector<1x128xf32>
    %cst = arith.constant dense<0.000000e+00> : vector<16x64xf32>
    %5 = tpu.matmul %1, %2, %cst {dimension_numbers = #tpu.dot_dimension_numbers<[1], [0], [0], [1], [0, 0, 1, 1], [], []>} : vector<16x32xbf16>, vector<32x64xbf16>, vector<16x64xf32> -> vector<16x64xf32>
    %6 = vector.extract_strided_slice %4 {offsets = [0, 0], sizes = [1, 64], strides = [1, 1]} : vector<1x128xf32> to vector<1x64xf32>
    %7 = vector.broadcast %6 : vector<1x64xf32> to vector<16x64xf32>
    %8 = arith.addf %5, %7 : vector<16x64xf32>
    %cst_6 = arith.constant 0.000000e+00 : f32
    %9 = vector.broadcast %cst_6 : f32 to vector<16x64xf32>
    %10 = arith.maximumf %8, %9 : vector<16x64xf32>
    %11 = arith.truncf %10 : vector<16x64xf32> to vector<16x64xbf16>
    %c0_7 = arith.constant 0 : index
    %c0_8 = arith.constant 0 : index
    %c0_9 = arith.constant 0 : index
    %12 = vector.load %arg3[%c0_7, %c0_8, %c0_9] : memref<3x64x64xbf16, #tpu.memory_space<vmem>>, vector<1x64x64xbf16>
    %13 = vector.shape_cast %12 : vector<1x64x64xbf16> to vector<64x64xbf16>
    %c1 = arith.constant 1 : index
    %c0_10 = arith.constant 0 : index
    %c0_11 = arith.constant 0 : index
    %14 = vector.load %arg5[%c1, %c0_10, %c0_11] : memref<5x1x128xf32, #tpu.memory_space<vmem>>, vector<1x1x128xf32>
    %15 = vector.shape_cast %14 : vector<1x1x128xf32> to vector<1x128xf32>
    %cst_12 = arith.constant dense<0.000000e+00> : vector<16x64xf32>
    %16 = tpu.matmul %11, %13, %cst_12 {dimension_numbers = #tpu.dot_dimension_numbers<[1], [0], [0], [1], [0, 0, 1, 1], [], []>} : vector<16x64xbf16>, vector<64x64xbf16>, vector<16x64xf32> -> vector<16x64xf32>
    %17 = vector.extract_strided_slice %15 {offsets = [0, 0], sizes = [1, 64], strides = [1, 1]} : vector<1x128xf32> to vector<1x64xf32>
    %18 = vector.broadcast %17 : vector<1x64xf32> to vector<16x64xf32>
    %19 = arith.addf %16, %18 : vector<16x64xf32>
    %cst_13 = arith.constant 0.000000e+00 : f32
    %20 = vector.broadcast %cst_13 : f32 to vector<16x64xf32>
    %21 = arith.maximumf %19, %20 : vector<16x64xf32>
    %22 = arith.truncf %21 : vector<16x64xf32> to vector<16x64xbf16>
    %c1_14 = arith.constant 1 : index
    %c0_15 = arith.constant 0 : index
    %c0_16 = arith.constant 0 : index
    %23 = vector.load %arg3[%c1_14, %c0_15, %c0_16] : memref<3x64x64xbf16, #tpu.memory_space<vmem>>, vector<1x64x64xbf16>
    %24 = vector.shape_cast %23 : vector<1x64x64xbf16> to vector<64x64xbf16>
    %c2 = arith.constant 2 : index
    %c0_17 = arith.constant 0 : index
    %c0_18 = arith.constant 0 : index
    %25 = vector.load %arg5[%c2, %c0_17, %c0_18] : memref<5x1x128xf32, #tpu.memory_space<vmem>>, vector<1x1x128xf32>
    %26 = vector.shape_cast %25 : vector<1x1x128xf32> to vector<1x128xf32>
    %cst_19 = arith.constant dense<0.000000e+00> : vector<16x64xf32>
    %27 = tpu.matmul %22, %24, %cst_19 {dimension_numbers = #tpu.dot_dimension_numbers<[1], [0], [0], [1], [0, 0, 1, 1], [], []>} : vector<16x64xbf16>, vector<64x64xbf16>, vector<16x64xf32> -> vector<16x64xf32>
    %28 = vector.extract_strided_slice %26 {offsets = [0, 0], sizes = [1, 64], strides = [1, 1]} : vector<1x128xf32> to vector<1x64xf32>
    %29 = vector.broadcast %28 : vector<1x64xf32> to vector<16x64xf32>
    %30 = arith.addf %27, %29 : vector<16x64xf32>
    %cst_20 = arith.constant 0.000000e+00 : f32
    %31 = vector.broadcast %cst_20 : f32 to vector<16x64xf32>
    %32 = arith.maximumf %30, %31 : vector<16x64xf32>
    %33 = arith.truncf %32 : vector<16x64xf32> to vector<16x64xbf16>
    %c2_21 = arith.constant 2 : index
    %c0_22 = arith.constant 0 : index
    %c0_23 = arith.constant 0 : index
    %34 = vector.load %arg3[%c2_21, %c0_22, %c0_23] : memref<3x64x64xbf16, #tpu.memory_space<vmem>>, vector<1x64x64xbf16>
    %35 = vector.shape_cast %34 : vector<1x64x64xbf16> to vector<64x64xbf16>
    %c3 = arith.constant 3 : index
    %c0_24 = arith.constant 0 : index
    %c0_25 = arith.constant 0 : index
    %36 = vector.load %arg5[%c3, %c0_24, %c0_25] : memref<5x1x128xf32, #tpu.memory_space<vmem>>, vector<1x1x128xf32>
    %37 = vector.shape_cast %36 : vector<1x1x128xf32> to vector<1x128xf32>
    %cst_26 = arith.constant dense<0.000000e+00> : vector<16x64xf32>
    %38 = tpu.matmul %33, %35, %cst_26 {dimension_numbers = #tpu.dot_dimension_numbers<[1], [0], [0], [1], [0, 0, 1, 1], [], []>} : vector<16x64xbf16>, vector<64x64xbf16>, vector<16x64xf32> -> vector<16x64xf32>
    %39 = vector.extract_strided_slice %37 {offsets = [0, 0], sizes = [1, 64], strides = [1, 1]} : vector<1x128xf32> to vector<1x64xf32>
    %40 = vector.broadcast %39 : vector<1x64xf32> to vector<16x64xf32>
    %41 = arith.addf %38, %40 : vector<16x64xf32>
    %cst_27 = arith.constant 0.000000e+00 : f32
    %42 = vector.broadcast %cst_27 : f32 to vector<16x64xf32>
    %43 = arith.maximumf %41, %42 : vector<16x64xf32>
    %44 = arith.truncf %43 : vector<16x64xf32> to vector<16x64xbf16>
    %c0_28 = arith.constant 0 : index
    %c0_29 = arith.constant 0 : index
    %45 = vector.load %arg4[%c0_28, %c0_29] : memref<64x16xbf16, #tpu.memory_space<vmem>>, vector<64x16xbf16>
    %c4 = arith.constant 4 : index
    %c0_30 = arith.constant 0 : index
    %c0_31 = arith.constant 0 : index
    %46 = vector.load %arg5[%c4, %c0_30, %c0_31] : memref<5x1x128xf32, #tpu.memory_space<vmem>>, vector<1x1x128xf32>
    %47 = vector.shape_cast %46 : vector<1x1x128xf32> to vector<1x128xf32>
    %cst_32 = arith.constant dense<0.000000e+00> : vector<16x16xf32>
    %48 = tpu.matmul %44, %45, %cst_32 {dimension_numbers = #tpu.dot_dimension_numbers<[1], [0], [0], [1], [0, 0, 1, 1], [], []>} : vector<16x64xbf16>, vector<64x16xbf16>, vector<16x16xf32> -> vector<16x16xf32>
    %49 = vector.extract_strided_slice %47 {offsets = [0, 0], sizes = [1, 16], strides = [1, 1]} : vector<1x128xf32> to vector<1x16xf32>
    %50 = vector.broadcast %49 : vector<1x16xf32> to vector<16x16xf32>
    %51 = arith.addf %48, %50 : vector<16x16xf32>
    %c0_33 = arith.constant 0 : index
    %c0_34 = arith.constant 0 : index
    %52 = vector.load %arg6[%c0_33, %c0_34] : memref<16x16xf32, #tpu.memory_space<vmem>>, vector<16x16xf32>
    tpu.vector_store %arg6[%c0_33, %c0_34], %51 {strides = array<i32>} : memref<16x16xf32, #tpu.memory_space<vmem>>, vector<16x16xf32>,
    return
  }
  func.func @transform_0(%arg0: i32) -> (i32, i32) {
    %c0_i32 = arith.constant 0 : i32
    %c0_i32_0 = arith.constant 0 : i32
    return %arg0, %c0_i32 : i32, i32
  }
  func.func @transform_1(%arg0: i32) -> (i32, i32) {
    %c0_i32 = arith.constant 0 : i32
    %c0_i32_0 = arith.constant 0 : i32
    %c0_i32_1 = arith.constant 0 : i32
    return %c0_i32, %c0_i32_0 : i32, i32
  }
  func.func @transform_2(%arg0: i32) -> (i32, i32, i32) {
    %c0_i32 = arith.constant 0 : i32
    %c0_i32_0 = arith.constant 0 : i32
    %c0_i32_1 = arith.constant 0 : i32
    %c0_i32_2 = arith.constant 0 : i32
    return %c0_i32, %c0_i32_0, %c0_i32_1 : i32, i32, i32
  }
  func.func @transform_3(%arg0: i32) -> (i32, i32) {
    %c0_i32 = arith.constant 0 : i32
    %c0_i32_0 = arith.constant 0 : i32
    %c0_i32_1 = arith.constant 0 : i32
    return %c0_i32, %c0_i32_0 : i32, i32
  }
  func.func @transform_4(%arg0: i32) -> (i32, i32, i32) {
    %c0_i32 = arith.constant 0 : i32
    %c0_i32_0 = arith.constant 0 : i32
    %c0_i32_1 = arith.constant 0 : i32
    %c0_i32_2 = arith.constant 0 : i32
    return %c0_i32, %c0_i32_0, %c0_i32_1 : i32, i32, i32
  }
  func.func @transform_5(%arg0: i32) -> (i32, i32) {
    %c0_i32 = arith.constant 0 : i32
    %c0_i32_0 = arith.constant 0 : i32
    return %arg0, %c0_i32 : i32, i32
  }
}

</mosaic_0001>

<bundles_post_ra>
// kernel: tpu_custom_call.1
= control target key start
LH: loop header
LB: loop body
LE: loop exit
PB: predicated region body
PF: predicated region fallthrough
CT: control target
= control target key end

     0   :  { %10 = vsyncpa [#allocation3], 0  ;;  %s579_s0 = inlined_call_operand.vmem [shape: f32[16,32], index: 0, kind: input, shape index: {}]   ;;  %s580_s1 = inlined_call_operand.vmem [shape: bf16[32,64], index: 1, kind: input, shape index: {}]   ;;  %s581_s2 = inlined_call_operand.hbm [shape: bf16[3,64,64], index: 2, kind: input, shape index: {}]   ;;  %s582_s3 = inlined_call_operand.vmem [shape: bf16[64,16], index: 3, kind: input, shape index: {}]   ;;  %s583_s4 = inlined_call_operand.vmem [shape: f32[5,1,128], index: 4, kind: input, shape index: {}]   ;;  %s584_s5 = inlined_call_operand.hbm [shape: f32[16,16], index: 5, kind: output, shape index: {}]  }
   0x1   :  { %11 = vsyncpa [#allocation4], 0  ;;  %s20_s20 = sshll.u32 %s581_s2, 4  ;;  %s494_s21 = smov [#allocation2]   ;;  %s21_s20 = int_to_ptr.hbm [resolvable:$true] %s20_s20 }
   0x2   :  { %s22_s22 = sshll.u32 %s494_s21, 4  ;;  %s495_s23 = smov 64   ;;  %s23_s22 = int_to_ptr.vmem [resolvable:$true] %s22_s22 }
   0x3   :  { %s496_s24 = smov 4  }
   0x4   :  { %28 = dma.hbm_to_vmem [thread:$0]  %s21_s20, 1536, %s23_s22, [#allocation3], %s495_s23, %s495_s23, %s496_s24  }
   0x5   :  { %490 = dma.done.wait [#allocation3], 1536  }
   0x6   :  { %491 = vsyncadd [#allocation3], 4294965760  ;;  %v414_v0 = vld [vmem:[%s580_s1 + $0x8] sm:$0xff]  ;;  %v413_v1 = vld [vmem:[%s580_s1] sm:$0xff]  ;;  %vm61_vm0 = vcmask 261120   ;;  %vm119_vm1 = vcmask 523264  }
   0x7   :  { %v38_v2 = vld [vmem:[%s579_s0] sm:$0xff]  ;;  %v39_v3 = vld [vmem:[%s579_s0 + $0x8] sm:$0xff]  ;;  %71 = vmatpush.bf16.msra.mxu0 %v414_v0  ;;  %v418_v5 = vld [vmem:[#allocation2 + $0x18] sm:$0xff]  ;;  %vm310_vm2 = vcmask 130048   ;;  %s319_s26 = sshll.u32 %s584_s5, 4  ;;  %s498_s27 = smov 128   ;;  %s320_s26 = int_to_ptr.hbm [resolvable:$true] %s319_s26 }
   0x8   :  { %v40_v4 = vpack.c.bf16 %v39_v3, %v38_v2  ;;  %127 = vmatpush.bf16.msra.mxu1 %v418_v5  ;;  %v417_v6 = vld [vmem:[#allocation2 + $0x10] sm:$0xff]  ;;  %v416_v7 = vld [vmem:[#allocation2 + $0x8] sm:$0xff]  ;;  %v415_v8 = vld [vmem:[#allocation2] sm:$0xff]  ;;  %s499_s28 = smov 8  }
   0x9   :  { %v437_v10 = vld [vmem:[%s583_s4] ss:$0 sm:$0xff]  ;;  %v422_v17 = vld [vmem:[#allocation2 + $0x38] sm:$0xff]  ;;  %v421_v18 = vld [vmem:[#allocation2 + $0x30] sm:$0xff] }
   0xa   :  { %185 = vmatpush.bf16.msra.mxu2 %v422_v17  ;;  %v420_v19 = vld [vmem:[#allocation2 + $0x28] sm:$0xff]  ;;  %v419_v20 = vld [vmem:[#allocation2 + $0x20] sm:$0xff]  ;;  %v426_v29 = vld [vmem:[#allocation2 + $0x58] sm:$0xff] }
   0xb   :  { %72 = vmatpush.bf16.msra.mxu0 %v413_v1  ;;  %v438_v22 = vld [vmem:[%s583_s4 + $0x1] ss:$0 sm:$0xff]  ;;  %243 = vmatpush.bf16.msra.mxu3 %v426_v29  ;;  %v425_v30 = vld [vmem:[#allocation2 + $0x50] sm:$0xff]  ;;  %v424_v31 = vld [vmem:[#allocation2 + $0x48] sm:$0xff] }
   0xc   :  { %128 = vmatpush.bf16.msra.mxu1 %v417_v6  ;;  %v423_v32 = vld [vmem:[#allocation2 + $0x40] sm:$0xff]  ;;  %v430_v33 = vld [vmem:[%s582_s3 + $0x18] sm:$0xff]  ;;  %v429_v42 = vld [vmem:[%s582_s3 + $0x10] sm:$0xff] }
   0xd   :  { %v439_v35 = vld [vmem:[%s583_s4 + $0x2] ss:$0 sm:$0xff]  ;;  %v428_v43 = vld [vmem:[%s582_s3 + $0x8] sm:$0xff]  ;;  %v440_v46 = vld [vmem:[%s583_s4 + $0x3] ss:$0 sm:$0xff] }
   0xe   :  { %340 = vmatmul.msk.bf16.vlgmr.msra.gmra.mxu0 %vm61_vm0, %v40_v4  ;;  %186 = vmatpush.bf16.msra.mxu2 %v421_v18  ;;  %v427_v44 = vld [vmem:[%s582_s3] sm:$0xff]  ;;  %s497_s3 = smov [#allocation5]  }
   0xf   :  { %244 = vmatpush.bf16.msra.mxu3 %v425_v30  ;;  %300 = vmatpush.bf16.msrb.mxu0 %v430_v33  ;;  %v441_v53 = vld [vmem:[%s583_s4 + $0x4] ss:$0 sm:$0xff]  ;;  %s317_s23 = sshll.u32 %s497_s3, 4  ;;  %s318_s23 = int_to_ptr.vmem [resolvable:$true] %s317_s23 }
  0x10   :  { %129 = vmatpush.bf16.msra.mxu1 %v416_v7 }
  0x12   :  { %187 = vmatpush.bf16.msra.mxu2 %v420_v19 }
  0x13   :  { %245 = vmatpush.bf16.msra.mxu3 %v424_v31  ;;  %301 = vmatpush.bf16.msrb.mxu0 %v429_v42 }
  0x14   :  { %130 = vmatpush.bf16.msra.mxu1 %v415_v8 }
  0x16   :  { %188 = vmatpush.bf16.msra.mxu2 %v419_v20 }
  0x17   :  { %246 = vmatpush.bf16.msra.mxu3 %v423_v32  ;;  %302 = vmatpush.bf16.msrb.mxu0 %v428_v43 }
  0x1b   :  { %303 = vmatpush.bf16.msrb.mxu0 %v427_v44 }
  0x8b   :  { %v74_v9 = vpop.f32.mrf.mxu0 }
  0x8c   :  { %v75_v11 = vadd.f32 %v437_v10, %v74_v9 }
  0x8e   :  { %v79_v14 = vmax.f32 %v75_v11, 0.0 }
  0x93   :  { %v76_v12 = vpop.f32.mrf.mxu0 }
  0x94   :  { %v77_v13 = vadd.f32 %v437_v10, %v76_v12 }
  0x96   :  { %v80_v15 = vmax.f32 %v77_v13, 0.0 }
  0x98   :  { %v81_v16 = vpack.c.bf16 %v80_v15, %v79_v14 }
  0x9a   :  { %358 = vmatmul.msk.bf16.vlgmr.msra.gmra.mxu1 %vm119_vm1, %v81_v16 }
 0x117   :  { %v132_v21 = vpop.f32.mrf.mxu1 }
 0x118   :  { %v133_v23 = vadd.f32 %v438_v22, %v132_v21 }
 0x11a   :  { %v137_v26 = vmax.f32 %v133_v23, 0.0 }
 0x11f   :  { %v134_v24 = vpop.f32.mrf.mxu1 }
 0x120   :  { %v135_v25 = vadd.f32 %v438_v22, %v134_v24 }
 0x122   :  { %v138_v27 = vmax.f32 %v135_v25, 0.0 }
 0x124   :  { %v139_v28 = vpack.c.bf16 %v138_v27, %v137_v26 }
 0x126   :  { %376 = vmatmul.msk.bf16.vlgmr.msra.gmra.mxu2 %vm119_vm1, %v139_v28 }
 0x1a9   :  { %v190_v34 = vpop.f32.mrf.mxu2 }
 0x1aa   :  { %v191_v36 = vadd.f32 %v439_v35, %v190_v34 }
 0x1ac   :  { %v195_v39 = vmax.f32 %v191_v36, 0.0 }
 0x1b1   :  { %v192_v37 = vpop.f32.mrf.mxu2 }
 0x1b2   :  { %v193_v38 = vadd.f32 %v439_v35, %v192_v37 }
 0x1b4   :  { %v196_v40 = vmax.f32 %v193_v38, 0.0 }
 0x1b6   :  { %v197_v41 = vpack.c.bf16 %v196_v40, %v195_v39 }
 0x1b8   :  { %394 = vmatmul.msk.bf16.vlgmr.msra.gmra.mxu3 %vm119_vm1, %v197_v41 }
 0x23b   :  { %v248_v45 = vpop.f32.mrf.mxu3 }
 0x23c   :  { %v249_v47 = vadd.f32 %v440_v46, %v248_v45 }
 0x23e   :  { %v253_v50 = vmax.f32 %v249_v47, 0.0 }
 0x243   :  { %v250_v48 = vpop.f32.mrf.mxu3 }
 0x244   :  { %v251_v49 = vadd.f32 %v440_v46, %v250_v48 }
 0x246   :  { %v254_v51 = vmax.f32 %v251_v49, 0.0 }
 0x248   :  { %v255_v52 = vpack.c.bf16 %v254_v51, %v253_v50 }
 0x24a   :  { %412 = vmatmul.msk.bf16.vlgmr.msrb.gmra.mxu0 %vm119_vm1, %v255_v52 }
 0x2c7   :  { %v305_v54 = vpop.f32.mrf.mxu0 }
 0x2c8   :  { %v306_v55 = vadd.f32 %v441_v53, %v305_v54 }
 0x2ca   :  { %311 = vst.msk [vmem:[#allocation5] sm:$0xff] %vm310_vm2, %v306_v55 }
 0x2cf   :  { %v307_v56 = vpop.f32.mrf.mxu0 }
 0x2d0   :  { %v308_v57 = vadd.f32 %v441_v53, %v307_v56 }
 0x2d2   :  { %312 = vst.msk [vmem:[#allocation5 + $0x8] sm:$0xff] %vm310_vm2, %v308_v57 }
 0x2d3   :  { %325 = dma.vmem_to_hbm [thread:$0]  %s318_s23, 256, %s320_s26, [#allocation4], %s498_s27, %s498_s27, %s499_s28  }
 0x2d4   :  { %492 = dma.done.wait [#allocation4], 256  }
 0x2d5   :  { %493 = vsyncadd [#allocation4], 4294967040 }
 0x2d6   :  { %330 = vsyncpa [#allocation3], 1 }
 0x2d7   :  { %331 = vsyncpa [#allocation4], 1 }

</bundles_post_ra>
